<compile_context>
chip_gen: v7x
topology: tpu7x:2x2x1
jax: 0.10.0
libtpu: 0.0.40
codegen_flags: <defaults>
</compile_context>

<pallas_src>
import functools

import jax
import jax.numpy as jnp
import numpy as np
from jax.experimental import pallas as pl
from jax.experimental.pallas import tpu as pltpu

# Loss hyper-parameters (match the PyTorch module __init__).
MAP_ALPHA = 0.1
MAP_BETA = 10.0
MAP_GAMMA = 0.9
FOCAL_ALPHA = 0.5
FOCAL_GAMMA = 2          # kept as an int; kernel uses an explicit multiply
NEG_SCALE = 2.0
INIT_BIAS_SCALE = 0.05

_LANE = 128
_TARGET_BLOCK_BYTES = 4 << 20    # ~4 MiB f32 logits block per pipeline buffer


def _round_up(x, m):
    return (x + m - 1) // m * m


def _dbloss_kernel(logits_ref, labels_ref, init_bias_ref, freq_inv_ref, out_ref,
                   *, rows_rem):
    tb, c = logits_ref.shape

    x = logits_ref[...]                               # (tb, C) f32
    y = labels_ref[...].astype(jnp.float32)           # (tb, C) bf16 -> f32
    init_bias = init_bias_ref[...]                    # (1, C), broadcasts over rows
    freq_inv = freq_inv_ref[...]                      # (1, C)

    # logit_reg_functions:  (x + b) * ((1-y)*NEG_SCALE + y)  ==  (x + b) * (2 - y)
    xb = x + init_bias
    x = xb * (NEG_SCALE - (NEG_SCALE - 1.0) * y)

    # One exp shared by the focal weight and the numerically-stable BCE.
    t = jnp.exp(-jnp.abs(x))                          # exp(-|x|) in (0, 1]
    inv_1pt = 1.0 / (1.0 + t)
    one_minus_p = jnp.where(x >= 0.0, t, 1.0) * inv_1pt   # == 1 - sigmoid(x)
    focal_weight = one_minus_p * one_minus_p               # focal_gamma == 2 -> VPU mul

    # binary_cross_entropy_with_logits (stable): max(x,0) - x*y + log(1 + exp(-|x|))
    bce = jnp.maximum(x, 0.0) - x * y + jnp.log(1.0 + t)

    # Rebalance weight; per-row reciprocal hoisted (tb divides, not tb*C).
    # Rows with no positive labels: repeat_rate == 0 -> inf -> sigmoid -> 1
    # (same behavior as the PyTorch module).
    repeat_rate = jnp.sum(y * freq_inv, axis=1, keepdims=True)    # (tb, 1)
    pos_weight = freq_inv * (1.0 / repeat_rate)                   # (tb, C)
    z = MAP_BETA * (pos_weight - MAP_GAMMA)                       # z >= -9 for valid rows
    rebalance = 1.0 / (1.0 + jnp.exp(-z)) + MAP_ALPHA

    # FOCAL_ALPHA and the 1/(B*C) mean scale are folded into the wrapper.
    loss = rebalance * (focal_weight * bce)

    if rows_rem:
        # Compiled only when B % tb != 0: mask the garbage rows of the ragged
        # last tile (jnp.where so NaN/Inf from garbage never survives).
        step = pl.program_id(0)
        limit = jnp.where(step == pl.num_programs(0) - 1, rows_rem, tb)
        row_ids = jax.lax.broadcasted_iota(jnp.int32, (tb, 1), 0)
        loss = jnp.where(row_ids < limit, loss, 0.0)

    # Lane-dense per-step partial: reduce over rows only (no lane reduce, no
    # carried accumulator).  Row 0 of the (8, C) output block carries the
    # per-column sums; rows 1..7 are zero.
    row_sum = jnp.sum(loss, axis=0, keepdims=True)                # (1, C)
    rows8 = jax.lax.broadcasted_iota(jnp.int32, (8, c), 0)
    out_ref[...] = jnp.where(rows8 == 0, jnp.broadcast_to(row_sum, (8, c)), 0.0)


def dbloss(logits, labels, init_bias, freq_inv, *, tb=None):
    """Compute the DB loss (scalar, float32).

    logits, labels: (B, C); init_bias, freq_inv: (1, C) or (C,).
    tb: batch-tile rows per grid step. Default targets ~4 MiB f32 logits
        blocks (fits comfortably in every generation's scoped VMEM with
        double-buffering).
    """
    logits = jnp.asarray(logits, jnp.float32)
    B, C = logits.shape
    labels_bf = jnp.asarray(labels).astype(jnp.bfloat16)   # 0/1 exact; 2 B/elem streamed
    init_bias = jnp.asarray(init_bias, jnp.float32).reshape(1, C)
    freq_inv = jnp.asarray(freq_inv, jnp.float32).reshape(1, C)

    c_lanes = _round_up(C, _LANE)

    # Batch tile: multiple of 16 rows (f32 & bf16 sublane friendly), or a
    # single full-height block when B is small (full-dim blocks need no
    # alignment and incur no padding / masking).
    if tb is None:
        tb = _TARGET_BLOCK_BYTES // (4 * c_lanes)
    tb = int(tb)
    if tb >= B:
        tb = B
    else:
        tb = max(16, (tb // 16) * 16)
        tb = min(tb, B)
    num_steps = pl.cdiv(B, tb)
    rows_rem = B % tb                 # nonzero only when the last tile is ragged

    kernel = functools.partial(_dbloss_kernel, rows_rem=rows_rem)

    # Double-buffered logits (f32) + labels (bf16) blocks dominate VMEM use.
    buf_bytes = 2 * tb * c_lanes * 4 + 2 * tb * c_lanes * 2
    vmem_limit = max(32 << 20, min(int(buf_bytes * 1.5) + (2 << 20), 64 << 20))

    cost = pl.CostEstimate(
        flops=22 * B * C,
        transcendentals=3 * B * C,
        bytes_accessed=6 * B * C + 4 * (num_steps * 8 * C + 2 * C),
    )

    partials = pl.pallas_call(
        kernel,
        out_shape=jax.ShapeDtypeStruct((num_steps * 8, C), jnp.float32),
        grid=(num_steps,),
        in_specs=[
            pl.BlockSpec((tb, C), lambda i: (i, 0)),     # logits tile (f32)
            pl.BlockSpec((tb, C), lambda i: (i, 0)),     # labels tile (bf16)
            pl.BlockSpec((1, C), lambda i: (0, 0)),      # init_bias (resident)
            pl.BlockSpec((1, C), lambda i: (0, 0)),      # freq_inv (resident)
        ],
        out_specs=pl.BlockSpec((8, C), lambda i: (i, 0)),  # per-step partial sums
        compiler_params=pltpu.CompilerParams(
            # No carried state -> megacore can shard the batch axis on v7x.
            dimension_semantics=("parallel",),
            vmem_limit_bytes=vmem_limit),
        cost_estimate=cost,
    )(logits, labels_bf, init_bias, freq_inv)

    # Tiny final reduction in the wrapper; FOCAL_ALPHA folded into the scale.
    return jnp.sum(partials) * (FOCAL_ALPHA / (B * C))


def _reference_dbloss(logits, labels, init_bias, freq_inv):
    # Pure-JAX reference mirroring the PyTorch forward.
    x = logits + init_bias
    x = x * (1.0 - labels) * NEG_SCALE + x * labels
    probs = jax.nn.sigmoid(x)
    focal_weight = (1.0 - probs) ** FOCAL_GAMMA
    bce = jnp.maximum(x, 0.0) - x * labels + jnp.log1p(jnp.exp(-jnp.abs(x)))
    focal_loss = FOCAL_ALPHA * focal_weight * bce
    repeat_rate = jnp.sum(labels * freq_inv, axis=1, keepdims=True)
    pos_weight = freq_inv / repeat_rate
    rebalance = jax.nn.sigmoid(MAP_BETA * (pos_weight - MAP_GAMMA)) + MAP_ALPHA
    return jnp.mean(rebalance * focal_loss)


if __name__ == "__main__":
    train_num = 10000.0
    key = jax.random.PRNGKey(0)

    def make_inputs(k, b, c):
        k_freq, k_logits, k_labels = jax.random.split(k, 3)
        class_freq = jax.random.uniform(
            k_freq, (c,), minval=10.0, maxval=1000.0, dtype=jnp.float32)
        freq_inv = (1.0 / class_freq).reshape(1, c)
        init_bias = (-jnp.log(train_num / class_freq - 1.0)
                     * INIT_BIAS_SCALE).reshape(1, c)
        logits = jax.random.normal(k_logits, (b, c), dtype=jnp.float32)
        labels = (jax.random.uniform(k_labels, (b, c)) < 0.3).astype(jnp.float32)
        # Ensure every row has at least one positive label (repeat_rate > 0),
        # matching the assumption of the original module.
        labels = labels.at[:, 0].set(1.0)
        return logits, labels, init_bias, freq_inv

    k1, k2, k3 = jax.random.split(key, 3)

    # Case 1: aligned shapes, single full-height block.
    args1 = make_inputs(k1, 8, 128)
    loss1 = dbloss(*args1)
    jax.block_until_ready(loss1)
    np.testing.assert_allclose(np.asarray(loss1),
                               np.asarray(_reference_dbloss(*args1)),
                               rtol=2e-4, atol=2e-6)

    # Case 2: unaligned B and C, multi-step grid with a ragged last tile
    # (exercises the row mask and the per-step partial outputs).
    args2 = make_inputs(k2, 37, 200)
    loss2 = dbloss(*args2, tb=16)
    jax.block_until_ready(loss2)
    np.testing.assert_allclose(np.asarray(loss2),
                               np.asarray(_reference_dbloss(*args2)),
                               rtol=2e-4, atol=2e-6)

    # Case 3: tile-aligned batch, unaligned class axis, multi-step grid
    # (mask code is compiled out on this path).
    args3 = make_inputs(k3, 64, 200)
    loss3 = dbloss(*args3, tb=16)
    jax.block_until_ready(loss3)
    np.testing.assert_allclose(np.asarray(loss3),
                               np.asarray(_reference_dbloss(*args3)),
                               rtol=2e-4, atol=2e-6)

    print("KERNEL_OK")
</pallas_src>

<mosaic_0001>
module attributes {stable_mosaic.version = 11 : i64} {
  func.func @_dbloss_kernel(%arg0: i32, %arg1: memref<8x128xf32, #tpu.memory_space<vmem>>, %arg2: memref<8x128xbf16, #tpu.memory_space<vmem>>, %arg3: memref<1x128xf32, #tpu.memory_space<vmem>>, %arg4: memref<1x128xf32, #tpu.memory_space<vmem>>, %arg5: memref<8x128xf32, #tpu.memory_space<vmem>>) attributes {dimension_semantics = [#tpu.dimension_semantics<parallel>], iteration_bounds = array<i64: 1>, scalar_prefetch = 0 : i64, scratch_operands = 0 : i64, tpu.core_type = #tpu.core_type<tc>, window_params = [{transform_indices = @transform_0, window_bounds = array<i64: 8, 128>}, {transform_indices = @transform_1, window_bounds = array<i64: 8, 128>}, {pipeline_mode = #tpu.pipeline_mode<synchronous>, transform_indices = @transform_2, window_bounds = array<i64: 1, 128>}, {pipeline_mode = #tpu.pipeline_mode<synchronous>, transform_indices = @transform_3, window_bounds = array<i64: 1, 128>}, {transform_indices = @transform_4, window_bounds = array<i64: 8, 128>}]} {
    %c0 = arith.constant 0 : index
    %c0_0 = arith.constant 0 : index
    %0 = vector.load %arg1[%c0, %c0_0] : memref<8x128xf32, #tpu.memory_space<vmem>>, vector<8x128xf32>
    %c0_1 = arith.constant 0 : index
    %c0_2 = arith.constant 0 : index
    %1 = vector.load %arg2[%c0_1, %c0_2] : memref<8x128xbf16, #tpu.memory_space<vmem>>, vector<8x128xbf16>
    %2 = arith.extf %1 : vector<8x128xbf16> to vector<8x128xf32>
    %c0_3 = arith.constant 0 : index
    %c0_4 = arith.constant 0 : index
    %3 = vector.load %arg3[%c0_3, %c0_4] : memref<1x128xf32, #tpu.memory_space<vmem>>, vector<1x128xf32>
    %c0_5 = arith.constant 0 : index
    %c0_6 = arith.constant 0 : index
    %4 = vector.load %arg4[%c0_5, %c0_6] : memref<1x128xf32, #tpu.memory_space<vmem>>, vector<1x128xf32>
    %5 = vector.broadcast %3 : vector<1x128xf32> to vector<8x128xf32>
    %6 = arith.addf %0, %5 : vector<8x128xf32>
    %cst = arith.constant 1.000000e+00 : f32
    %7 = vector.broadcast %cst : f32 to vector<8x128xf32>
    %8 = arith.mulf %7, %2 : vector<8x128xf32>
    %cst_7 = arith.constant 2.000000e+00 : f32
    %9 = vector.broadcast %cst_7 : f32 to vector<8x128xf32>
    %10 = arith.subf %9, %8 : vector<8x128xf32>
    %11 = arith.mulf %6, %10 : vector<8x128xf32>
    %12 = math.absf %11 : vector<8x128xf32>
    %cst_8 = arith.constant 0.000000e+00 : f32
    %13 = vector.broadcast %cst_8 : f32 to vector<8x128xf32>
    %14 = arith.subf %13, %12 : vector<8x128xf32>
    %15 = math.exp %14 : vector<8x128xf32>
    %cst_9 = arith.constant 1.000000e+00 : f32
    %16 = vector.broadcast %cst_9 : f32 to vector<8x128xf32>
    %17 = arith.addf %16, %15 : vector<8x128xf32>
    %cst_10 = arith.constant 1.000000e+00 : f32
    %18 = vector.broadcast %cst_10 : f32 to vector<8x128xf32>
    %19 = arith.divf %18, %17 : vector<8x128xf32>
    %cst_11 = arith.constant 0.000000e+00 : f32
    %20 = vector.broadcast %cst_11 : f32 to vector<8x128xf32>
    %21 = arith.cmpf oge, %11, %20 : vector<8x128xf32>
    %cst_12 = arith.constant 1.000000e+00 : f32
    %22 = vector.broadcast %cst_12 : f32 to vector<8x128xf32>
    %23 = arith.select %21, %15, %22 : vector<8x128xi1>, vector<8x128xf32>
    %24 = arith.mulf %23, %19 : vector<8x128xf32>
    %25 = arith.mulf %24, %24 : vector<8x128xf32>
    %cst_13 = arith.constant 0.000000e+00 : f32
    %26 = vector.broadcast %cst_13 : f32 to vector<8x128xf32>
    %27 = arith.maximumf %11, %26 : vector<8x128xf32>
    %28 = arith.mulf %11, %2 : vector<8x128xf32>
    %29 = arith.subf %27, %28 : vector<8x128xf32>
    %cst_14 = arith.constant 1.000000e+00 : f32
    %30 = vector.broadcast %cst_14 : f32 to vector<8x128xf32>
    %31 = arith.addf %30, %15 : vector<8x128xf32>
    %32 = math.log %31 : vector<8x128xf32>
    %33 = arith.addf %29, %32 : vector<8x128xf32>
    %34 = vector.broadcast %4 : vector<1x128xf32> to vector<8x128xf32>
    %35 = arith.mulf %2, %34 : vector<8x128xf32>
    %cst_15 = arith.constant dense<0.000000e+00> : vector<8xf32>
    %36 = vector.multi_reduction <add>, %35, %cst_15 [1] : vector<8x128xf32> to vector<8xf32>
    %37 = vector.shape_cast %36 : vector<8xf32> to vector<8x1xf32>
    %cst_16 = arith.constant 1.000000e+00 : f32
    %38 = vector.broadcast %cst_16 : f32 to vector<8x1xf32>
    %39 = arith.divf %38, %37 : vector<8x1xf32>
    %40 = vector.broadcast %4 : vector<1x128xf32> to vector<8x128xf32>
    %41 = vector.broadcast %39 : vector<8x1xf32> to vector<8x128xf32>
    %42 = arith.mulf %40, %41 : vector<8x128xf32>
    %cst_17 = arith.constant 0.899999976 : f32
    %43 = vector.broadcast %cst_17 : f32 to vector<8x128xf32>
    %44 = arith.subf %42, %43 : vector<8x128xf32>
    %cst_18 = arith.constant 1.000000e+01 : f32
    %45 = vector.broadcast %cst_18 : f32 to vector<8x128xf32>
    %46 = arith.mulf %45, %44 : vector<8x128xf32>
    %cst_19 = arith.constant 0.000000e+00 : f32
    %47 = vector.broadcast %cst_19 : f32 to vector<8x128xf32>
    %48 = arith.subf %47, %46 : vector<8x128xf32>
    %49 = math.exp %48 : vector<8x128xf32>
    %cst_20 = arith.constant 1.000000e+00 : f32
    %50 = vector.broadcast %cst_20 : f32 to vector<8x128xf32>
    %51 = arith.addf %50, %49 : vector<8x128xf32>
    %cst_21 = arith.constant 1.000000e+00 : f32
    %52 = vector.broadcast %cst_21 : f32 to vector<8x128xf32>
    %53 = arith.divf %52, %51 : vector<8x128xf32>
    %cst_22 = arith.constant 1.000000e-01 : f32
    %54 = vector.broadcast %cst_22 : f32 to vector<8x128xf32>
    %55 = arith.addf %53, %54 : vector<8x128xf32>
    %56 = arith.mulf %25, %33 : vector<8x128xf32>
    %57 = arith.mulf %55, %56 : vector<8x128xf32>
    %cst_23 = arith.constant dense<0.000000e+00> : vector<128xf32>
    %58 = vector.multi_reduction <add>, %57, %cst_23 [0] : vector<8x128xf32> to vector<128xf32>
    %59 = vector.shape_cast %58 : vector<128xf32> to vector<1x128xf32>
    %60 = tpu.iota {dimensions = array<i32: 0>} : vector<8x128xi32>
    %c0_i32 = arith.constant 0 : i32
    %61 = vector.broadcast %c0_i32 : i32 to vector<8x128xi32>
    %62 = arith.cmpi eq, %60, %61 : vector<8x128xi32>
    %63 = vector.shape_cast %59 : vector<1x128xf32> to vector<1x128xf32>
    %64 = vector.broadcast %63 : vector<1x128xf32> to vector<8x128xf32>
    %cst_24 = arith.constant 0.000000e+00 : f32
    %65 = vector.broadcast %cst_24 : f32 to vector<8x128xf32>
    %66 = arith.select %62, %64, %65 : vector<8x128xi1>, vector<8x128xf32>
    %c0_25 = arith.constant 0 : index
    %c0_26 = arith.constant 0 : index
    %67 = vector.load %arg5[%c0_25, %c0_26] : memref<8x128xf32, #tpu.memory_space<vmem>>, vector<8x128xf32>
    tpu.vector_store %arg5[%c0_25, %c0_26], %66 {strides = array<i32>} : memref<8x128xf32, #tpu.memory_space<vmem>>, vector<8x128xf32>,
    return
  }
  func.func @transform_0(%arg0: i32) -> (i32, i32) {
    %c0_i32 = arith.constant 0 : i32
    %c0_i32_0 = arith.constant 0 : i32
    return %arg0, %c0_i32 : i32, i32
  }
  func.func @transform_1(%arg0: i32) -> (i32, i32) {
    %c0_i32 = arith.constant 0 : i32
    %c0_i32_0 = arith.constant 0 : i32
    return %arg0, %c0_i32 : i32, i32
  }
  func.func @transform_2(%arg0: i32) -> (i32, i32) {
    %c0_i32 = arith.constant 0 : i32
    %c0_i32_0 = arith.constant 0 : i32
    %c0_i32_1 = arith.constant 0 : i32
    return %c0_i32, %c0_i32_0 : i32, i32
  }
  func.func @transform_3(%arg0: i32) -> (i32, i32) {
    %c0_i32 = arith.constant 0 : i32
    %c0_i32_0 = arith.constant 0 : i32
    %c0_i32_1 = arith.constant 0 : i32
    return %c0_i32, %c0_i32_0 : i32, i32
  }
  func.func @transform_4(%arg0: i32) -> (i32, i32) {
    %c0_i32 = arith.constant 0 : i32
    %c0_i32_0 = arith.constant 0 : i32
    return %arg0, %c0_i32 : i32, i32
  }
}

</mosaic_0001>

<bundles_post_ra>
// kernel: tpu_custom_call.1
= control target key start
LH: loop header
LB: loop body
LE: loop exit
PB: predicated region body
PF: predicated region fallthrough
CT: control target
= control target key end

     0   :  { %9 = vsyncpa [#allocation3], 0  ;;  %s283_s0 = inlined_call_operand.hbm [shape: f32[8,128], index: 0, kind: input, shape index: {}]   ;;  %s284_s1 = inlined_call_operand.hbm [shape: bf16[8,128], index: 1, kind: input, shape index: {}]   ;;  %s285_s2 = inlined_call_operand.vmem [shape: f32[1,128], index: 2, kind: input, shape index: {}]   ;;  %s286_s3 = inlined_call_operand.vmem [shape: f32[1,128], index: 3, kind: input, shape index: {}]   ;;  %s287_s4 = inlined_call_operand.hbm [shape: f32[8,128], index: 4, kind: output, shape index: {}]  }
   0x1   :  { %10 = vsyncpa [#allocation6], 0 }
   0x2   :  { %11 = vsyncpa [#allocation4], 0  ;;  %s213_s15 = smov [#allocation2]   ;;  %s214_s17 = smov [#allocation5]  }
   0x3   :  { %s18_s16 = sshll.u32 %s213_s15, 4  ;;  %s28_s18 = sshll.u32 %s214_s17, 4  ;;  %s19_s16 = int_to_ptr.vmem [resolvable:$true] %s18_s16  ;;  %s29_s18 = int_to_ptr.vmem [resolvable:$true] %s28_s18 }
   0x4   :  { %s141_s21 = scalar_lea.hbm %s283_s0, 128 }
   0x5   :  { %p142_p0 = scmp.ne.s32.totalorder %s283_s0, %s141_s21  ;;  %p145_p1 = scmp.lt.u32.totalorder %s141_s21, %s283_s0 }
   0x7   :  { %p147_p2 = pnand %p145_p1, %p142_p0 }
   0x9   :  { %150 = shalt.err (!%p147_p2)
}
   0xa   :  { %s151_s26 = scalar_lea.vmem %s19_s16, 128  ;;  %p156_p4 = scmp.lt.s32.totalorder %s19_s16, %s19_s16 }
   0xb   :  { %p152_p3 = scmp.ne.s32.totalorder %s19_s16, %s151_s26  ;;  %p157_p5 = scmp.lt.s32.totalorder %s151_s26, %s151_s26 }
   0xd   :  { %p158_p6 = por %p157_p5, %p156_p4 }
   0xf   :  { %p159_p7 = pnand %p158_p6, %p152_p3 }
  0x11   :  { %162 = shalt.err (!%p159_p7)
}
  0x12   :  { %21 = dma.hbm_to_vmem [thread:$0]  %s283_s0, 128, %s19_s16, [#allocation3]  }
  0x13   :  { %s163_s5 = scalar_lea.hbm %s284_s1, 64 }
  0x14   :  { %p164_p8 = scmp.ne.s32.totalorder %s284_s1, %s163_s5  ;;  %p167_p9 = scmp.lt.u32.totalorder %s163_s5, %s284_s1 }
  0x16   :  { %p169_p10 = pnand %p167_p9, %p164_p8 }
  0x18   :  { %172 = shalt.err (!%p169_p10)
}
  0x19   :  { %s173_s10 = scalar_lea.vmem %s29_s18, 64  ;;  %p178_p12 = scmp.lt.s32.totalorder %s29_s18, %s29_s18 }
  0x1a   :  { %p174_p11 = scmp.ne.s32.totalorder %s29_s18, %s173_s10  ;;  %p179_p13 = scmp.lt.s32.totalorder %s173_s10, %s173_s10 }
  0x1c   :  { %p180_p0 = por %p179_p13, %p178_p12 }
  0x1e   :  { %p181_p1 = pnand %p180_p0, %p174_p11 }
  0x20   :  { %184 = shalt.err (!%p181_p1)
}
  0x21   :  { %31 = dma.hbm_to_vmem [thread:$0]  %s284_s1, 64, %s29_s18, [#allocation6]  }
  0x22   :  { %207 = dma.done.wait [#allocation3], 128  }
  0x23   :  { %208 = vsyncadd [#allocation3], 4294967168 }
  0x24   :  { %209 = dma.done.wait [#allocation6], 64  }
  0x25   :  { %210 = vsyncadd [#allocation6], 4294967232  ;;  %v43_v0 = vld [vmem:[#allocation5] sm:$0xf]  ;;  %v124_v2 = vld [vmem:[%s286_s3] ss:$0 sm:$0xff]  ;;  %v102_v38 = vlaneseq }
  0x26   :  { %v44_v1 = vunpack.c.l.bf16 %v43_v0  ;;  %v42_v4 = vld [vmem:[#allocation2] sm:$0xff]  ;;  %s215_s1 = smov [#allocation7]  }
  0x27   :  { %v123_v5 = vld [vmem:[%s285_s2] ss:$0 sm:$0xff]  ;;  %v103_v41 = vshrl.u32 %v102_v38, 7  ;;  %s113_s2 = sshll.u32 %s215_s1, 4  ;;  %s114_s2 = int_to_ptr.vmem [resolvable:$true] %s113_s2 }
  0x28   :  { %v79_v3 = vmul.f32 %v124_v2, %v44_v1  ;;  %v53_v6 = vadd.f32 %v123_v5, %v42_v4  ;;  %v54_v7 = vsub.f32 2.0, %v44_v1  ;;  %s185_s3 = scalar_lea.vmem %s114_s2, 128  ;;  %p190_p3 = scmp.lt.s32.totalorder %s114_s2, %s114_s2 }
  0x29   :  { %vm104_vm1 = vcmp.eq.s32.totalorder %v103_v41, 0  ;;  %p186_p2 = scmp.ne.s32.totalorder %s114_s2, %s185_s3  ;;  %p191_p4 = scmp.lt.s32.totalorder %s185_s3, %s185_s3 }
  0x2a   :  { %80 = vadd.xlane.f32.xlu0 %v79_v3  ;;  %v55_v8 = vmul.f32 %v54_v7, %v53_v6 }
  0x2b   :  { %p192_p5 = por %p191_p4, %p190_p3 }
  0x2c   :  { %v56_v9 = vand.u32 2147483647, %v55_v8  ;;  %vm63_vm0 = vcmp.ge.f32.partialorder %v55_v8, 0.0  ;;  %v67_v23 = vmax.f32 %v55_v8, 0.0  ;;  %v68_v24 = vmul.f32 %v55_v8, %v44_v1 }
  0x2d   :  { %p193_p6 = pnand %p192_p5, %p186_p2 }
  0x2e   :  { %v57_v10 = vsub.f32 0.0, %v56_v9  ;;  %v69_v28 = vsub.f32 %v67_v23, %v68_v24 }
  0x30   :  { %v58_v11 = vmul.f32 1.442695, %v57_v10 }
  0xb7   :  { %v81_v12 = vpop.xlane.xlu0 %80 }
  0xb8   :  { %129 = vrcp.f32 %v81_v12 }
  0xb9   :  { %131 = vpow2.f32 %v58_v11 }
  0xc2   :  { %v130_v13 = vpop.eup %129 }
  0xc3   :  { %v84_v14 = vmul.f32 %v130_v13, %v124_v2  ;;  %v132_v15 = vpop.eup %131 }
  0xc4   :  { %v60_v18 = vadd.f32 1.0, %v132_v15  ;;  %v64_v26 = vsel %vm63_vm0, %v132_v15, 1.0 }
  0xc5   :  { %v125_v16 = vadd.f32 -0.9, %v84_v14 }
  0xc6   :  { %133 = vrcp.f32 %v60_v18 }
  0xc7   :  { %v86_v17 = vmul.f32 10.0, %v125_v16 }
  0xc9   :  { %v87_v19 = vsub.f32 0.0, %v86_v17 }
  0xcb   :  { %v88_v20 = vmul.f32 1.442695, %v87_v19 }
  0xcd   :  { %135 = vpow2.f32 %v88_v20 }
  0xce   :  { %137 = vlog2.f32 %v60_v18 }
  0xd0   :  { %v134_v21 = vpop.eup %133 }
  0xd1   :  { %v65_v30 = vmul.f32 %v134_v21, %v64_v26 }
  0xd3   :  { %v66_v32 = vmul.f32 %v65_v30, %v65_v30 }
  0xd7   :  { %v136_v22 = vpop.eup %135 }
  0xd8   :  { %v138_v25 = vpop.eup %137  ;;  %v90_v27 = vadd.f32 1.0, %v136_v22 }
  0xd9   :  { %v71_v29 = vmul.f32 0.6931472, %v138_v25 }
  0xda   :  { %139 = vrcp.f32 %v90_v27 }
  0xdb   :  { %v72_v31 = vadd.f32 %v71_v29, %v69_v28 }
  0xdd   :  { %v94_v33 = vmul.f32 %v72_v31, %v66_v32 }
  0xe4   :  { %v140_v34 = vpop.eup %139 }
  0xe5   :  { %v93_v35 = vadd.f32 0.1, %v140_v34 }
  0xe7   :  { %v95_v36 = vmul.f32 %v94_v33, %v93_v35 }
  0xe9   :  { %v96_v37 = vrot.slane %v95_v36, 4 }
  0xeb   :  { %v97_v39 = vadd.f32 %v96_v37, %v95_v36 }
  0xed   :  { %v98_v40 = vrot.slane %v97_v39, 2 }
  0xef   :  { %v99_v42 = vadd.f32 %v98_v40, %v97_v39 }
  0xf1   :  { %v100_v43 = vrot.slane %v99_v42, 1 }
  0xf3   :  { %v101_v44 = vadd.f32 %v100_v43, %v99_v42 }
  0xf5   :  { %v105_v45 = vsel %vm104_vm1, %v101_v44, 0.0 }
  0xf6   :  { %106 = vst [vmem:[#allocation7] sm:$0xff] %v105_v45 }
  0xf7   :  { %196 = shalt.err (!%p193_p6)
}
  0xf8   :  { %s197_s18 = scalar_lea.hbm %s287_s4, 128 }
  0xf9   :  { %p198_p7 = scmp.ne.s32.totalorder %s287_s4, %s197_s18  ;;  %p201_p8 = scmp.lt.u32.totalorder %s197_s18, %s287_s4 }
  0xfb   :  { %p203_p9 = pnand %p201_p8, %p198_p7 }
  0xfd   :  { %206 = shalt.err (!%p203_p9)
}
  0xfe   :  { %116 = dma.vmem_to_hbm [thread:$0]  %s114_s2, 128, %s287_s4, [#allocation4]  }
  0xff   :  { %211 = dma.done.wait [#allocation4], 128  }
 0x100   :  { %212 = vsyncadd [#allocation4], 4294967168 }
 0x101   :  { %120 = vsyncpa [#allocation3], 1 }
 0x102   :  { %121 = vsyncpa [#allocation6], 1 }
 0x103   :  { %122 = vsyncpa [#allocation4], 1 }

</bundles_post_ra>
